<compile_context>
chip_gen: v7x
topology: tpu7x:2x2x1
jax: 0.10.0
libtpu: 0.0.40
codegen_flags: <defaults>
</compile_context>

<pallas_src>
import jax
import jax.numpy as jnp
from jax.experimental import pallas as pl
from jax.experimental.pallas import tpu as pltpu

LANE = 128           # TPU lane width (hidden dim 24 is zero-padded to this)
TILE_B_MAX = 8192    # x tile at 8192x32 f32 = 1 MiB; double-buffered ~2 MiB -> safe everywhere
TILE_B_SPLIT = 1024  # above this batch size, split into >=4 grid steps (v7x megacore + pipelining)
SMALL_BATCH = 512    # below this, plain XLA is faster than pallas_call launch overhead


def _round_up(n, m):
    return ((n + m - 1) // m) * m


def _pad_last(a, target):
    pad = target - a.shape[-1]
    return jnp.pad(a, ((0, 0), (0, pad))) if pad else a


def _mlp_kernel(x_ref, w1_ref, b1_ref, w3_ref, b3_ref, o_ref):
    # Cast x in-kernel (VPU work, hidden under DMA/MXU); wrapper keeps x in f32.
    x = x_ref[...].astype(jnp.bfloat16)
    # fc1 (bf16 MXU, f32 accumulate) + bias + ReLU in f32.
    h = jnp.dot(x, w1_ref[...], preferred_element_type=jnp.float32)
    h = jnp.maximum(h + b1_ref[...], 0.0)
    # Dropout(p=0.2) in eval mode is identity; relu(relu(h)) == relu(h), so the
    # second ReLU is a no-op and omitted.
    # fc3 (bf16 MXU, f32 accumulate) + bias, stored at the true output width.
    out = jnp.dot(h.astype(jnp.bfloat16), w3_ref[...],
                  preferred_element_type=jnp.float32)
    o_ref[...] = (out + b3_ref[...]).astype(o_ref.dtype)


def prepare_params(w1, b1, w3, b3):
    """One-time: zero-pad hidden dim to 128 lanes, cast matmul operands to bf16.

    Accepts torch-style 1-D biases or (1, n) biases. Output dim is NOT padded
    (narrow masked stores are cheaper than writing 124 zero f32 columns).
    """
    b1 = jnp.asarray(b1).reshape(1, -1)
    b3 = jnp.asarray(b3).reshape(1, -1)
    hidden = w1.shape[1]
    hp = _round_up(hidden, LANE)                       # 24 -> 128
    w1p = _pad_last(jnp.asarray(w1), hp).astype(jnp.bfloat16)
    b1p = _pad_last(b1, hp).astype(jnp.float32)
    w3p = jnp.pad(jnp.asarray(w3), ((0, hp - w3.shape[0]), (0, 0))).astype(jnp.bfloat16)
    b3p = b3.astype(jnp.float32)
    return w1p, b1p, w3p, b3p


def _pick_tile_b(B):
    tile_b = _round_up(B, 8)
    if tile_b > TILE_B_SPLIT:
        # Large batch: aim for >= 4 grid steps (v7x has 2 TCs; also gives the
        # auto-pipeline something to overlap), but never shrink below
        # TILE_B_SPLIT (per-step overhead) nor grow above TILE_B_MAX (VMEM).
        tile_b = max(TILE_B_SPLIT, min(TILE_B_MAX, _round_up(pl.cdiv(B, 4), 8)))
    return tile_b


def policy_value_forward_pallas(x, w1p, b1p, w3p, b3p):
    """x: (B, input_size) f32; padded params from prepare_params -> (B, out_size) f32."""
    B, in_size = x.shape
    hp = w1p.shape[1]
    out_size = w3p.shape[1]

    tile_b = _pick_tile_b(B)
    grid = (pl.cdiv(B, tile_b),)          # ragged tail block is masked by Pallas

    flops = 2 * B * (in_size * hp + hp * out_size)
    bytes_accessed = (x.size * 4 + w1p.size * 2 + b1p.size * 4 +
                      w3p.size * 2 + b3p.size * 4 + B * out_size * 4)

    return pl.pallas_call(
        _mlp_kernel,
        out_shape=jax.ShapeDtypeStruct((B, out_size), jnp.float32),
        grid=grid,
        in_specs=[
            pl.BlockSpec((tile_b, in_size), lambda i: (i, 0)),   # x tiled over batch (f32)
            pl.BlockSpec(w1p.shape, lambda i: (0, 0)),           # weights resident in VMEM
            pl.BlockSpec(b1p.shape, lambda i: (0, 0)),
            pl.BlockSpec(w3p.shape, lambda i: (0, 0)),
            pl.BlockSpec(b3p.shape, lambda i: (0, 0)),
        ],
        out_specs=pl.BlockSpec((tile_b, out_size), lambda i: (i, 0)),  # narrow f32 output
        compiler_params=pltpu.CompilerParams(
            dimension_semantics=("parallel",)),
        cost_estimate=pl.CostEstimate(flops=flops,
                                      bytes_accessed=bytes_accessed,
                                      transcendentals=0),
    )(x, w1p, b1p, w3p, b3p)


def _xla_forward(x, w1p, b1p, w3p, b3p):
    """Plain-XLA fallback with identical (bf16-MXU / f32-accumulate) math."""
    h = jnp.maximum(
        jnp.dot(x.astype(jnp.bfloat16), w1p, preferred_element_type=jnp.float32) + b1p, 0.0)
    return jnp.dot(h.astype(jnp.bfloat16), w3p,
                   preferred_element_type=jnp.float32) + b3p


def policy_value_forward(x, w1p, b1p, w3p, b3p, use_pallas=None):
    """Dispatcher: tiny batches (< SMALL_BATCH) use XLA to skip pallas_call launch cost."""
    if use_pallas is None:
        use_pallas = x.shape[0] >= SMALL_BATCH
    if use_pallas:
        return policy_value_forward_pallas(x, w1p, b1p, w3p, b3p)
    return _xla_forward(x, w1p, b1p, w3p, b3p)


def init_params(key, input_size, output_size, hidden=24):
    """Deterministic init mimicking nn.Linear's U(-1/sqrt(fan_in), 1/sqrt(fan_in))."""
    k1, k2, k3, k4 = jax.random.split(key, 4)
    bound1 = 1.0 / jnp.sqrt(jnp.float32(input_size))
    bound3 = 1.0 / jnp.sqrt(jnp.float32(hidden))
    # Stored as (in, out) so the kernel does x @ W directly.
    w1 = jax.random.uniform(k1, (input_size, hidden), jnp.float32, -bound1, bound1)
    b1 = jax.random.uniform(k2, (hidden,), jnp.float32, -bound1, bound1)
    w3 = jax.random.uniform(k3, (hidden, output_size), jnp.float32, -bound3, bound3)
    b3 = jax.random.uniform(k4, (output_size,), jnp.float32, -bound3, bound3)
    return w1, b1, w3, b3


if __name__ == "__main__":
    key = jax.random.PRNGKey(0)
    kx, kp = jax.random.split(key)

    batch = 8
    input_size = 32
    output_size = 4

    x = jax.random.normal(kx, (batch, input_size), jnp.float32)
    w1, b1, w3, b3 = init_params(kp, input_size, output_size)
    w1p, b1p, w3p, b3p = prepare_params(w1, b1, w3, b3)

    # Force the Pallas path so the kernel is exercised even at this demo batch.
    out = policy_value_forward(x, w1p, b1p, w3p, b3p, use_pallas=True)
    out = jax.block_until_ready(out)
    assert out.shape == (batch, output_size)

    # Reference mirroring the kernel's bf16-MXU / f32-accumulate math.
    ref = _xla_forward(x, w1p, b1p, w3p, b3p)
    assert jnp.allclose(out, ref, atol=2e-3, rtol=2e-3)

    # Loose check against the original full-f32 module math (bf16 rounding only).
    ref_f32 = jnp.maximum(x @ w1 + b1[None, :], 0.0) @ w3 + b3[None, :]
    assert jnp.allclose(out, ref_f32, atol=5e-2, rtol=5e-2)

    # Dispatcher (XLA small-batch path) must agree as well.
    out_disp = jax.block_until_ready(policy_value_forward(x, w1p, b1p, w3p, b3p))
    assert jnp.allclose(out, out_disp, atol=2e-3, rtol=2e-3)

    print("KERNEL_OK")
</pallas_src>

<mosaic_0001>
module attributes {stable_mosaic.version = 11 : i64} {
  func.func @_mlp_kernel(%arg0: i32, %arg1: memref<8x32xf32, #tpu.memory_space<vmem>>, %arg2: memref<32x128xbf16, #tpu.memory_space<vmem>>, %arg3: memref<1x128xf32, #tpu.memory_space<vmem>>, %arg4: memref<128x4xbf16, #tpu.memory_space<vmem>>, %arg5: memref<1x4xf32, #tpu.memory_space<vmem>>, %arg6: memref<8x4xf32, #tpu.memory_space<vmem>>) attributes {dimension_semantics = [#tpu.dimension_semantics<parallel>], iteration_bounds = array<i64: 1>, scalar_prefetch = 0 : i64, scratch_operands = 0 : i64, tpu.core_type = #tpu.core_type<tc>, window_params = [{transform_indices = @transform_0, window_bounds = array<i64: 8, 32>}, {pipeline_mode = #tpu.pipeline_mode<synchronous>, transform_indices = @transform_1, window_bounds = array<i64: 32, 128>}, {pipeline_mode = #tpu.pipeline_mode<synchronous>, transform_indices = @transform_2, window_bounds = array<i64: 1, 128>}, {pipeline_mode = #tpu.pipeline_mode<synchronous>, transform_indices = @transform_3, window_bounds = array<i64: 128, 4>}, {pipeline_mode = #tpu.pipeline_mode<synchronous>, transform_indices = @transform_4, window_bounds = array<i64: 1, 4>}, {transform_indices = @transform_5, window_bounds = array<i64: 8, 4>}]} {
    %c0 = arith.constant 0 : index
    %c0_0 = arith.constant 0 : index
    %0 = vector.load %arg1[%c0, %c0_0] : memref<8x32xf32, #tpu.memory_space<vmem>>, vector<8x32xf32>
    %1 = arith.truncf %0 : vector<8x32xf32> to vector<8x32xbf16>
    %c0_1 = arith.constant 0 : index
    %c0_2 = arith.constant 0 : index
    %2 = vector.load %arg2[%c0_1, %c0_2] : memref<32x128xbf16, #tpu.memory_space<vmem>>, vector<32x128xbf16>
    %cst = arith.constant dense<0.000000e+00> : vector<8x128xf32>
    %3 = tpu.matmul %1, %2, %cst {dimension_numbers = #tpu.dot_dimension_numbers<[1], [0], [0], [1], [0, 0, 1, 1], [], []>} : vector<8x32xbf16>, vector<32x128xbf16>, vector<8x128xf32> -> vector<8x128xf32>
    %c0_3 = arith.constant 0 : index
    %c0_4 = arith.constant 0 : index
    %4 = vector.load %arg3[%c0_3, %c0_4] : memref<1x128xf32, #tpu.memory_space<vmem>>, vector<1x128xf32>
    %5 = vector.broadcast %4 : vector<1x128xf32> to vector<8x128xf32>
    %6 = arith.addf %3, %5 : vector<8x128xf32>
    %cst_5 = arith.constant 0.000000e+00 : f32
    %7 = vector.broadcast %cst_5 : f32 to vector<8x128xf32>
    %8 = arith.maximumf %6, %7 : vector<8x128xf32>
    %9 = arith.truncf %8 : vector<8x128xf32> to vector<8x128xbf16>
    %c0_6 = arith.constant 0 : index
    %c0_7 = arith.constant 0 : index
    %10 = vector.load %arg4[%c0_6, %c0_7] : memref<128x4xbf16, #tpu.memory_space<vmem>>, vector<128x4xbf16>
    %cst_8 = arith.constant dense<0.000000e+00> : vector<8x4xf32>
    %11 = tpu.matmul %9, %10, %cst_8 {dimension_numbers = #tpu.dot_dimension_numbers<[1], [0], [0], [1], [0, 0, 1, 1], [], []>} : vector<8x128xbf16>, vector<128x4xbf16>, vector<8x4xf32> -> vector<8x4xf32>
    %c0_9 = arith.constant 0 : index
    %c0_10 = arith.constant 0 : index
    %12 = vector.load %arg5[%c0_9, %c0_10] : memref<1x4xf32, #tpu.memory_space<vmem>>, vector<1x4xf32>
    %13 = vector.broadcast %12 : vector<1x4xf32> to vector<8x4xf32>
    %14 = arith.addf %11, %13 : vector<8x4xf32>
    %c0_11 = arith.constant 0 : index
    %c0_12 = arith.constant 0 : index
    %15 = vector.load %arg6[%c0_11, %c0_12] : memref<8x4xf32, #tpu.memory_space<vmem>>, vector<8x4xf32>
    tpu.vector_store %arg6[%c0_11, %c0_12], %14 {strides = array<i32>} : memref<8x4xf32, #tpu.memory_space<vmem>>, vector<8x4xf32>,
    return
  }
  func.func @transform_0(%arg0: i32) -> (i32, i32) {
    %c0_i32 = arith.constant 0 : i32
    %c0_i32_0 = arith.constant 0 : i32
    return %arg0, %c0_i32 : i32, i32
  }
  func.func @transform_1(%arg0: i32) -> (i32, i32) {
    %c0_i32 = arith.constant 0 : i32
    %c0_i32_0 = arith.constant 0 : i32
    %c0_i32_1 = arith.constant 0 : i32
    return %c0_i32, %c0_i32_0 : i32, i32
  }
  func.func @transform_2(%arg0: i32) -> (i32, i32) {
    %c0_i32 = arith.constant 0 : i32
    %c0_i32_0 = arith.constant 0 : i32
    %c0_i32_1 = arith.constant 0 : i32
    return %c0_i32, %c0_i32_0 : i32, i32
  }
  func.func @transform_3(%arg0: i32) -> (i32, i32) {
    %c0_i32 = arith.constant 0 : i32
    %c0_i32_0 = arith.constant 0 : i32
    %c0_i32_1 = arith.constant 0 : i32
    return %c0_i32, %c0_i32_0 : i32, i32
  }
  func.func @transform_4(%arg0: i32) -> (i32, i32) {
    %c0_i32 = arith.constant 0 : i32
    %c0_i32_0 = arith.constant 0 : i32
    %c0_i32_1 = arith.constant 0 : i32
    return %c0_i32, %c0_i32_0 : i32, i32
  }
  func.func @transform_5(%arg0: i32) -> (i32, i32) {
    %c0_i32 = arith.constant 0 : i32
    %c0_i32_0 = arith.constant 0 : i32
    return %arg0, %c0_i32 : i32, i32
  }
}

</mosaic_0001>

<bundles_post_ra>
// kernel: tpu_custom_call.1
= control target key start
LH: loop header
LB: loop body
LE: loop exit
PB: predicated region body
PF: predicated region fallthrough
CT: control target
= control target key end

     0   :  { %v274_v0 = vmov 0.0   ;;  %vm275_vm0 = vmmov 0   ;;  %vm46_vm1 = vcmask 261120   ;;  %vm203_vm2 = vcmask 31744   ;;  %s348_s1 = inlined_call_operand.vmem [shape: bf16[32,128], index: 1, kind: input, shape index: {}]   ;;  %s349_s0 = inlined_call_operand.vmem [shape: f32[8,32], index: 0, kind: input, shape index: {}]   ;;  %s350_s3 = inlined_call_operand.vmem [shape: bf16[128,4], index: 3, kind: input, shape index: {}]   ;;  %s351_s2 = inlined_call_operand.vmem [shape: f32[1,128], index: 2, kind: input, shape index: {}]   ;;  %s352_s4 = inlined_call_operand.vmem [shape: f32[1,4], index: 4, kind: input, shape index: {}]   ;;  %s353_s5 = inlined_call_operand.vmem [shape: f32[8,4], index: 5, kind: output, shape index: {}]  }
   0x1   :  { %234 = vmatprep.subr.bf16.mxu0 %v274_v0  ;;  %v264_v1 = vld [vmem:[%s348_s1] sm:$0xff]   ;;  %238 = vmatprep.mubr.msk.bf16.mxu0 %vm275_vm0, %v274_v0  ;;  %v265_v2 = vld [vmem:[%s348_s1 + $0x8] sm:$0xff]   ;;  %v268_v7 = vld [vmem:[%s350_s3 + $0x10] sm:$0xff]  }
   0x2   :  { %242 = vmatprep.subr.bf16.mxu1 %v274_v0  ;;  %258 = vmatprep.mubr.msk.bf16.mxu1 %vm275_vm0, %v274_v0  ;;  %v21_v3 = vld [vmem:[%s349_s0] sm:$0xff]  ;;  %v267_v6 = vld [vmem:[%s350_s3 + $0x8] sm:$0xff]   ;;  %v269_v8 = vld [vmem:[%s350_s3 + $0x18] sm:$0xff]  }
   0x3   :  { %235 = vmatpush3.bf16.msra.mxu0 %v264_v1  ;;  %v266_v4 = vld [vmem:[%s350_s3] sm:$0xff]   ;;  %v22_v5 = vpack.c.bf16 %v21_v3, %v21_v3  ;;  %v271_v10 = vld [vmem:[%s350_s3 + $0x28] sm:$0xff]   ;;  %v272_v11 = vld [vmem:[%s350_s3 + $0x30] sm:$0xff]  }
   0x4   :  { %236 = vmatprep.subr.bf16.mxu0 %v274_v0  ;;  %243 = vmatpush3.bf16.msra.mxu1 %v266_v4  ;;  %v270_v9 = vld [vmem:[%s350_s3 + $0x20] sm:$0xff]   ;;  %v273_v12 = vld [vmem:[%s350_s3 + $0x38] sm:$0xff]  }
   0x5   :  { %244 = vmatprep.subr.bf16.mxu1 %v274_v0  ;;  %v209_v13 = vld [vmem:[%s351_s2] ss:$0 sm:$0xff] }
   0x6   :  { %v213_v21 = vld [vmem:[%s352_s4] ss:$0 sm:$0xff] }
   0x7   :  { %237 = vmatpush3.bf16.msra.mxu0 %v265_v2 }
   0x8   :  { %245 = vmatpush3.bf16.msra.mxu1 %v267_v6 }
   0x9   :  { %246 = vmatprep.subr.bf16.mxu1 %v274_v0 }
   0xa   :  { %239 = vmatmul.mubr.msk.bf16.vlgmr.msra.gmra.mrb[0].mxu0 %vm46_vm1, %v22_v5 }
   0xc   :  { %247 = vmatpush3.bf16.msra.mxu1 %v268_v7 }
   0xd   :  { %248 = vmatprep.subr.bf16.mxu1 %v274_v0 }
  0x10   :  { %249 = vmatpush3.bf16.msra.mxu1 %v269_v8 }
  0x11   :  { %250 = vmatprep.subr.bf16.mxu1 %v274_v0 }
  0x14   :  { %251 = vmatpush3.bf16.msra.mxu1 %v270_v9 }
  0x15   :  { %252 = vmatprep.subr.bf16.mxu1 %v274_v0 }
  0x18   :  { %253 = vmatpush3.bf16.msra.mxu1 %v271_v10 }
  0x19   :  { %254 = vmatprep.subr.bf16.mxu1 %v274_v0 }
  0x1c   :  { %255 = vmatpush3.bf16.msra.mxu1 %v272_v11 }
  0x1d   :  { %256 = vmatprep.subr.bf16.mxu1 %v274_v0 }
  0x20   :  { %257 = vmatpush3.bf16.msra.mxu1 %v273_v12 }
  0xdd   :  { %v84_v14 = vpop.f32.mrb[0].mxu0 }
  0xde   :  { %v85_v15 = vadd.f32 %v209_v13, %v84_v14  ;;  %v240_v16 = vpop.f32.mrb[1].mxu0 }
  0xdf   :  { %v87_v17 = vpop.f32.mrb[2].mxu0 }
  0xe0   :  { %v90_v18 = vmax.f32 %v85_v15, 0.0  ;;  %v241_v19 = vpop.f32.mrb[3].mxu0 }
  0xe2   :  { %v91_v20 = vpack.c.bf16 %v90_v18, %v90_v18 }
  0xe4   :  { %259 = vmatmul.mubr.bf16.vlgmr.msra.gmra.mrb[0].mxu1 %v91_v20 }
 0x1b7   :  { %v197_v22 = vpop.f32.mrb[0].mxu1 }
 0x1b8   :  { %v198_v23 = vadd.f32 %v213_v21, %v197_v22  ;;  %v260_v24 = vpop.f32.mrb[1].mxu1 }
 0x1b9   :  { %v200_v25 = vpop.f32.mrb[2].mxu1 }
 0x1ba   :  { %204 = vst.msk [vmem:[%s353_s5] sm:$0xff] %vm203_vm2, %v198_v23  ;;  %v261_v26 = vpop.f32.mrb[3].mxu1 }

</bundles_post_ra>
